<compile_context>
chip_gen: v5e
topology: v5e:2x2
jax: 0.10.0
libtpu: 0.0.40
codegen_flags: <defaults>
</compile_context>

<pallas_src>
import functools

import jax
import jax.numpy as jnp
from jax import lax
from jax.experimental import pallas as pl
from jax.experimental.pallas import tpu as pltpu

LANES = 128
_EPS = 1e-5


def _packed_kernel(x_ref, seg_ref, scale_ref, bias_ref, o_ref, *, d):
    """Lane-packed path: each 128-lane row holds 128//d logical rows.

    Segmented (per-d-lane) reductions via a block-diagonal ones matmul so the
    whole tile stays lane-dense (no masked vst, no 4x lane waste for d=32).
    """
    x = x_ref[...].astype(jnp.float32)                      # (tr, 128)
    seg = seg_ref[...]                                      # (128, 128) 0/1 block-diag
    s1 = lax.dot(x, seg, precision=lax.Precision.HIGHEST,
                 preferred_element_type=jnp.float32)        # per-segment sum, bcast
    s2 = lax.dot(x * x, seg, precision=lax.Precision.HIGHEST,
                 preferred_element_type=jnp.float32)        # per-segment sum of squares
    mean = s1 * jnp.float32(1.0 / d)
    # unbiased variance (torch default); d == 1 is degenerate (torch gives NaN)
    var = (s2 - s1 * mean) * jnp.float32(1.0 / max(d - 1, 1))
    inv_std = lax.rsqrt(var + jnp.float32(_EPS))
    out = (x - mean) * inv_std * scale_ref[...] + bias_ref[...]
    o_ref[...] = out.astype(o_ref.dtype)


def _rowwise_kernel(x_ref, scale_ref, bias_ref, o_ref, *, d):
    """Fallback path (D >= 128 or D doesn't divide 128): one row per sublane row."""
    x = x_ref[...].astype(jnp.float32)                      # (tr, D)
    s1 = jnp.sum(x, axis=-1, keepdims=True)
    s2 = jnp.sum(x * x, axis=-1, keepdims=True)
    mean = s1 * jnp.float32(1.0 / d)
    var = (s2 - s1 * mean) * jnp.float32(1.0 / max(d - 1, 1))
    inv_std = lax.rsqrt(var + jnp.float32(_EPS))
    out = (x - mean) * inv_std * scale_ref[...] + bias_ref[...]
    o_ref[...] = out.astype(o_ref.dtype)


def _pick_row_tile(n_rows, target):
    """Largest legal row tile: full extent, else a multiple of 8 <= target."""
    if n_rows <= target:
        return n_rows                      # block == full dim is always legal
    t = max(8, target - (target % 8))
    c = t
    while c >= 8:                          # prefer an exact divisor (no padding)
        if n_rows % c == 0:
            return c
        c -= 8
    return t                               # no divisor: keep big tile, pad rows


def distribution_alignment(x, scale, bias, *, tile_rows=2048):
    """x: (B,H,S,D); scale: (1,1,1,D); bias: (D,). Returns same shape/dtype as x."""
    B, H, S, D = x.shape
    rows = B * H * S
    scale_f = scale.reshape(D).astype(jnp.float32)
    bias_f = bias.reshape(D).astype(jnp.float32)

    use_packed = (D < LANES) and (LANES % D == 0) and (rows % (LANES // D) == 0)

    if use_packed:
        g = LANES // D                                      # logical rows per lane row
        n = rows // g
        x2 = x.reshape(n, LANES)
        scale2 = jnp.tile(scale_f, g).reshape(1, LANES)
        bias2 = jnp.tile(bias_f, g).reshape(1, LANES)
        lane = jnp.arange(LANES, dtype=jnp.int32)
        seg = (lane[:, None] // D == lane[None, :] // D).astype(jnp.float32)
        kernel = functools.partial(_packed_kernel, d=D)
        width = LANES
        extra = [(seg, pl.BlockSpec((LANES, LANES), lambda i: (0, 0)))]
    else:
        n = rows
        x2 = x.reshape(n, D)
        scale2 = scale_f.reshape(1, D)
        bias2 = bias_f.reshape(1, D)
        kernel = functools.partial(_rowwise_kernel, d=D)
        width = D
        extra = []

    tr = _pick_row_tile(n, tile_rows)
    n_pad = pl.cdiv(n, tr) * tr
    if n_pad != n:
        # Zero-padded rows compute harmless values and are sliced off below.
        x2 = jnp.pad(x2, ((0, n_pad - n), (0, 0)))
    grid = (n_pad // tr,)

    ins = [x2] + [a for a, _ in extra] + [scale2, bias2]
    in_specs = ([pl.BlockSpec((tr, width), lambda i: (i, 0))]
                + [s for _, s in extra]
                + [pl.BlockSpec((1, width), lambda i: (0, 0)),
                   pl.BlockSpec((1, width), lambda i: (0, 0))])

    out2 = pl.pallas_call(
        kernel,
        out_shape=jax.ShapeDtypeStruct((n_pad, width), x.dtype),
        grid_spec=pl.GridSpec(
            grid=grid,
            in_specs=in_specs,
            out_specs=pl.BlockSpec((tr, width), lambda i: (i, 0)),
        ),
        compiler_params=pltpu.CompilerParams(
            dimension_semantics=("parallel",)),
    )(*ins)

    if n_pad != n:
        out2 = out2[:n]
    return out2.reshape(B, H, S, D)


def _reference(x, scale, bias):
    xf = x.astype(jnp.float32)
    mean = jnp.mean(xf, axis=-1, keepdims=True)
    var = jnp.var(xf, axis=-1, keepdims=True, ddof=1)   # unbiased, like torch
    out = (xf - mean) / jnp.sqrt(var + 1e-5)
    out = scale.astype(jnp.float32) * out + bias.astype(jnp.float32)
    return out.astype(x.dtype)


if __name__ == "__main__":
    key = jax.random.PRNGKey(0)
    kx, ks, kb, kx2, ks2, kb2 = jax.random.split(key, 6)

    # TODO(synk): training-time init_state re-initialization is stateful module
    # bookkeeping (no effect on forward math) and is intentionally not modeled.

    # Primary test: head_dim=32 -> lane-packed path (4 rows per 128-lane row).
    B, H, S, D = 2, 4, 8, 32
    x = jax.random.normal(kx, (B, H, S, D), dtype=jnp.float32)
    scale = jnp.ones((1, 1, 1, D), jnp.float32) + 0.1 * jax.random.normal(ks, (1, 1, 1, D))
    bias = 0.1 * jax.random.normal(kb, (D,))
    out = jax.block_until_ready(distribution_alignment(x, scale, bias))
    ref = _reference(x, scale, bias)
    assert out.shape == x.shape and out.dtype == x.dtype
    assert jnp.allclose(out, ref, atol=2e-5, rtol=2e-5), float(jnp.max(jnp.abs(out - ref)))

    # Secondary test: head_dim=128 -> already lane-dense, row-wise fallback path.
    B2, H2, S2, D2 = 2, 2, 8, 128
    xb = jax.random.normal(kx2, (B2, H2, S2, D2), dtype=jnp.float32)
    scaleb = jnp.ones((1, 1, 1, D2), jnp.float32) + 0.1 * jax.random.normal(ks2, (1, 1, 1, D2))
    biasb = 0.1 * jax.random.normal(kb2, (D2,))
    outb = jax.block_until_ready(distribution_alignment(xb, scaleb, biasb))
    refb = _reference(xb, scaleb, biasb)
    assert jnp.allclose(outb, refb, atol=2e-5, rtol=2e-5), float(jnp.max(jnp.abs(outb - refb)))

    print("KERNEL_OK")
</pallas_src>

<mosaic_0001>
module attributes {stable_mosaic.version = 11 : i64} {
  func.func @_packed_kernel(%arg0: i32, %arg1: memref<16x128xf32, #tpu.memory_space<vmem>>, %arg2: memref<128x128xf32, #tpu.memory_space<vmem>>, %arg3: memref<1x128xf32, #tpu.memory_space<vmem>>, %arg4: memref<1x128xf32, #tpu.memory_space<vmem>>, %arg5: memref<16x128xf32, #tpu.memory_space<vmem>>) attributes {dimension_semantics = [#tpu.dimension_semantics<parallel>], iteration_bounds = array<i64: 1>, scalar_prefetch = 0 : i64, scratch_operands = 0 : i64, tpu.core_type = #tpu.core_type<tc>, window_params = [{transform_indices = @transform_0, window_bounds = array<i64: 16, 128>}, {pipeline_mode = #tpu.pipeline_mode<synchronous>, transform_indices = @transform_1, window_bounds = array<i64: 128, 128>}, {pipeline_mode = #tpu.pipeline_mode<synchronous>, transform_indices = @transform_2, window_bounds = array<i64: 1, 128>}, {pipeline_mode = #tpu.pipeline_mode<synchronous>, transform_indices = @transform_3, window_bounds = array<i64: 1, 128>}, {transform_indices = @transform_4, window_bounds = array<i64: 16, 128>}]} {
    %c0 = arith.constant 0 : index
    %c0_0 = arith.constant 0 : index
    %0 = vector.load %arg1[%c0, %c0_0] : memref<16x128xf32, #tpu.memory_space<vmem>>, vector<16x128xf32>
    %c0_1 = arith.constant 0 : index
    %c0_2 = arith.constant 0 : index
    %1 = vector.load %arg2[%c0_1, %c0_2] : memref<128x128xf32, #tpu.memory_space<vmem>>, vector<128x128xf32>
    %cst = arith.constant dense<0.000000e+00> : vector<16x128xf32>
    %2 = tpu.matmul %0, %1, %cst {dimension_numbers = #tpu.dot_dimension_numbers<[1], [0], [0], [1], [0, 0, 1, 1], [], []>, precision = #tpu.contract_precision<fp32>} : vector<16x128xf32>, vector<128x128xf32>, vector<16x128xf32> -> vector<16x128xf32>
    %3 = arith.mulf %0, %0 : vector<16x128xf32>
    %cst_3 = arith.constant dense<0.000000e+00> : vector<16x128xf32>
    %4 = tpu.matmul %3, %1, %cst_3 {dimension_numbers = #tpu.dot_dimension_numbers<[1], [0], [0], [1], [0, 0, 1, 1], [], []>, precision = #tpu.contract_precision<fp32>} : vector<16x128xf32>, vector<128x128xf32>, vector<16x128xf32> -> vector<16x128xf32>
    %cst_4 = arith.constant 3.125000e-02 : f32
    %5 = vector.broadcast %cst_4 : f32 to vector<16x128xf32>
    %6 = arith.mulf %2, %5 : vector<16x128xf32>
    %7 = arith.mulf %2, %6 : vector<16x128xf32>
    %8 = arith.subf %4, %7 : vector<16x128xf32>
    %cst_5 = arith.constant 0.0322580636 : f32
    %9 = vector.broadcast %cst_5 : f32 to vector<16x128xf32>
    %10 = arith.mulf %8, %9 : vector<16x128xf32>
    %cst_6 = arith.constant 9.99999974E-6 : f32
    %11 = vector.broadcast %cst_6 : f32 to vector<16x128xf32>
    %12 = arith.addf %10, %11 : vector<16x128xf32>
    %13 = math.rsqrt %12 : vector<16x128xf32>
    %14 = arith.subf %0, %6 : vector<16x128xf32>
    %15 = arith.mulf %14, %13 : vector<16x128xf32>
    %c0_7 = arith.constant 0 : index
    %c0_8 = arith.constant 0 : index
    %16 = vector.load %arg3[%c0_7, %c0_8] : memref<1x128xf32, #tpu.memory_space<vmem>>, vector<1x128xf32>
    %17 = vector.broadcast %16 : vector<1x128xf32> to vector<16x128xf32>
    %18 = arith.mulf %15, %17 : vector<16x128xf32>
    %c0_9 = arith.constant 0 : index
    %c0_10 = arith.constant 0 : index
    %19 = vector.load %arg4[%c0_9, %c0_10] : memref<1x128xf32, #tpu.memory_space<vmem>>, vector<1x128xf32>
    %20 = vector.broadcast %19 : vector<1x128xf32> to vector<16x128xf32>
    %21 = arith.addf %18, %20 : vector<16x128xf32>
    %c0_11 = arith.constant 0 : index
    %c0_12 = arith.constant 0 : index
    %22 = vector.load %arg5[%c0_11, %c0_12] : memref<16x128xf32, #tpu.memory_space<vmem>>, vector<16x128xf32>
    tpu.vector_store %arg5[%c0_11, %c0_12], %21 {strides = array<i32>} : memref<16x128xf32, #tpu.memory_space<vmem>>, vector<16x128xf32>,
    return
  }
  func.func @transform_0(%arg0: i32) -> (i32, i32) {
    %c0_i32 = arith.constant 0 : i32
    %c0_i32_0 = arith.constant 0 : i32
    return %arg0, %c0_i32 : i32, i32
  }
  func.func @transform_1(%arg0: i32) -> (i32, i32) {
    %c0_i32 = arith.constant 0 : i32
    %c0_i32_0 = arith.constant 0 : i32
    %c0_i32_1 = arith.constant 0 : i32
    return %c0_i32, %c0_i32_0 : i32, i32
  }
  func.func @transform_2(%arg0: i32) -> (i32, i32) {
    %c0_i32 = arith.constant 0 : i32
    %c0_i32_0 = arith.constant 0 : i32
    %c0_i32_1 = arith.constant 0 : i32
    return %c0_i32, %c0_i32_0 : i32, i32
  }
  func.func @transform_3(%arg0: i32) -> (i32, i32) {
    %c0_i32 = arith.constant 0 : i32
    %c0_i32_0 = arith.constant 0 : i32
    %c0_i32_1 = arith.constant 0 : i32
    return %c0_i32, %c0_i32_0 : i32, i32
  }
  func.func @transform_4(%arg0: i32) -> (i32, i32) {
    %c0_i32 = arith.constant 0 : i32
    %c0_i32_0 = arith.constant 0 : i32
    return %arg0, %c0_i32 : i32, i32
  }
}

</mosaic_0001>

<bundles_post_ra>
// kernel: tpu_custom_call.1
= control target key start
LH: loop header
LB: loop body
LE: loop exit
PB: predicated region body
PF: predicated region fallthrough
CT: control target
= control target key end

     0   :  { %9 = vsyncpa [#allocation3], 0  ;;  %s1461_s0 = inlined_call_operand.hbm [shape: f32[16,128], index: 0, kind: input, shape index: {}]   ;;  %s1462_s1 = inlined_call_operand.hbm [shape: f32[128,128], index: 1, kind: input, shape index: {}]   ;;  %s1463_s2 = inlined_call_operand.vmem [shape: f32[1,128], index: 2, kind: input, shape index: {}]   ;;  %s1464_s3 = inlined_call_operand.vmem [shape: f32[1,128], index: 3, kind: input, shape index: {}]   ;;  %s1465_s4 = inlined_call_operand.hbm [shape: f32[16,128], index: 4, kind: output, shape index: {}]  }
   0x1   :  { %10 = vsyncpa [#allocation6], 0 }
   0x2   :  { %11 = vsyncpa [#allocation4], 0  ;;  %s16_s17 = sshll.u32 %s1461_s0, 4  ;;  %s971_s18 = smov [#allocation2]   ;;  %s17_s17 = int_to_ptr.hbm [resolvable:$true] %s16_s17 }
   0x3   :  { %s18_s19 = sshll.u32 %s971_s18, 4  ;;  %s29_s22 = sshll.u32 %s1462_s1, 4  ;;  %s19_s19 = int_to_ptr.vmem [resolvable:$true] %s18_s19  ;;  %s30_s22 = int_to_ptr.hbm [resolvable:$true] %s29_s22 }
   0x4   :  { %s972_s23 = smov 128   ;;  %s973_s24 = smov 8  }
   0x5   :  { %24 = dma.hbm_to_vmem [thread:$0]  %s17_s17, 256, %s19_s19, [#allocation3], %s972_s23, %s972_s23, %s973_s24  }
   0x6   :  { %s974_s25 = smov [#allocation5]  }
   0x7   :  { %s31_s26 = sshll.u32 %s974_s25, 4  ;;  %s32_s26 = int_to_ptr.vmem [resolvable:$true] %s31_s26 }
   0x8   :  { %37 = dma.hbm_to_vmem [thread:$0]  %s30_s22, 2048, %s32_s26, [#allocation6], %s972_s23, %s972_s23, %s973_s24  }
   0x9   :  { %965 = dma.done.wait [#allocation3], 256  }
   0xa   :  { %966 = vsyncadd [#allocation3], 4294967040 }
   0xb   :  { %967 = dma.done.wait [#allocation6], 2048  }
   0xc   :  { %968 = vsyncadd [#allocation6], 4294965248  ;;  %v67_v0 = vld [vmem:[#allocation5 + $0x78] sm:$0xff]  ;;  %v66_v1 = vld [vmem:[#allocation5 + $0x70] sm:$0xff]  ;;  %s868_s6 = sshll.u32 %s1465_s4, 4  ;;  %s869_s6 = int_to_ptr.hbm [resolvable:$true] %s868_s6 }
   0xd   :  { %v65_v2 = vld [vmem:[#allocation5 + $0x68] sm:$0xff]  ;;  %v1013_v3 = vand.u32 4294901760, %v67_v0  ;;  %v1015_v4 = vand.u32 4294901760, %v66_v1  ;;  %v64_v6 = vld [vmem:[#allocation5 + $0x60] sm:$0xff]  ;;  %v63_v7 = vld [vmem:[#allocation5 + $0x58] sm:$0xff] }
   0xe   :  { %v1017_v5 = vand.u32 4294901760, %v65_v2  ;;  %v62_v8 = vld [vmem:[#allocation5 + $0x50] sm:$0xff]  ;;  %v1019_v9 = vand.u32 4294901760, %v64_v6  ;;  %v1021_v10 = vand.u32 4294901760, %v63_v7  ;;  %v61_v12 = vld [vmem:[#allocation5 + $0x48] sm:$0xff]  ;;  %v60_v13 = vld [vmem:[#allocation5 + $0x40] sm:$0xff] }
   0xf   :  { %v1023_v11 = vand.u32 4294901760, %v62_v8  ;;  %69 = vmatpush.msra.mxu0 %v1013_v3  ;;  %v1027_v14 = vsub.f32 %v67_v0, %v1013_v3  ;;  %v1030_v15 = vsub.f32 %v66_v1, %v1015_v4  ;;  %282 = vmatpush.msra.mxu3 %v1013_v3  ;;  %v1036_v17 = vand.u32 4294901760, %v61_v12  ;;  %v59_v18 = vld [vmem:[#allocation5 + $0x38] sm:$0xff]  ;;  %v58_v26 = vld [vmem:[#allocation5 + $0x30] sm:$0xff]  ;;  %v57_v36 = vld [vmem:[#allocation5 + $0x28] sm:$0xff] }
  0x10   :  { %v1034_v16 = vsub.f32 %v65_v2, %v1017_v5  ;;  %v1039_v19 = vsub.f32 %v64_v6, %v1019_v9  ;;  %v1042_v20 = vsub.f32 %v63_v7, %v1021_v10  ;;  %v1044_v21 = vand.u32 4294901760, %v60_v13  ;;  %v56_v42 = vld [vmem:[#allocation5 + $0x20] sm:$0xff]  ;;  %v55_v48 = vld [vmem:[#allocation5 + $0x18] sm:$0xff]  ;;  %v54_v54 = vld [vmem:[#allocation5 + $0x10] sm:$0xff] }
  0x11   :  { %71 = vmatpush.msra.mxu0 %v1015_v4  ;;  %224 = vmatpush.msra.mxu2 %v1027_v14  ;;  %v1049_v22 = vand.u32 4294901760, %v1027_v14  ;;  %v1052_v23 = vand.u32 4294901760, %v1030_v15  ;;  %v1058_v25 = vsub.f32 %v62_v8, %v1023_v11  ;;  %v1064_v28 = vand.u32 4294901760, %v59_v18  ;;  %v53_v60 = vld [vmem:[#allocation5 + $0x8] sm:$0xff]  ;;  %v52_v2 = vld [vmem:[#allocation5] sm:$0xff] }
  0x12   :  { %v1055_v24 = vand.u32 4294901760, %v1034_v16  ;;  %284 = vmatpush.msra.mxu3 %v1015_v4  ;;  %v1062_v27 = vand.u32 4294901760, %v1039_v19  ;;  %v1067_v29 = vsub.f32 %v61_v12, %v1036_v17  ;;  %v1078_v33 = vand.u32 4294901760, %v1042_v20 }
  0x13   :  { %73 = vmatpush.msra.mxu0 %v1017_v5  ;;  %227 = vmatpush.msra.mxu2 %v1030_v15  ;;  %v120_v30 = vsub.f32 %v1027_v14, %v1049_v22  ;;  %v126_v31 = vsub.f32 %v1030_v15, %v1052_v23  ;;  %v1081_v34 = vand.u32 4294901760, %v58_v26  ;;  %v1084_v35 = vsub.f32 %v60_v13, %v1044_v21 }
  0x14   :  { %v132_v32 = vsub.f32 %v1034_v16, %v1055_v24  ;;  %286 = vmatpush.msra.mxu3 %v1017_v5  ;;  %v138_v39 = vsub.f32 %v1039_v19, %v1062_v27  ;;  %v1095_v40 = vand.u32 4294901760, %v1058_v25  ;;  %v1099_v41 = vand.u32 4294901760, %v1067_v29 }
  0x15   :  { %75 = vmatpush.msra.mxu0 %v1019_v9  ;;  %v1087_v37 = vand.u32 4294901760, %v120_v30  ;;  %230 = vmatpush.msra.mxu2 %v1034_v16  ;;  %v1090_v38 = vand.u32 4294901760, %v126_v31  ;;  %v144_v44 = vsub.f32 %v1042_v20, %v1078_v33  ;;  %v1107_v45 = vand.u32 4294901760, %v57_v36 }
  0x16   :  { %288 = vmatpush.msra.mxu3 %v1019_v9  ;;  %v1103_v43 = vand.u32 4294901760, %v132_v32  ;;  %v1110_v46 = vsub.f32 %v59_v18, %v1064_v28  ;;  %v1115_v47 = vand.u32 4294901760, %v1084_v35  ;;  %v1119_v49 = vand.u32 4294901760, %v138_v39 }
  0x17   :  { %77 = vmatpush.msra.mxu0 %v1021_v10  ;;  %122 = vmatpush.msra.mxu1 %v1087_v37  ;;  %v150_v50 = vsub.f32 %v1058_v25, %v1095_v40  ;;  %v1123_v51 = vand.u32 4294901760, %v56_v42  ;;  %v1126_v52 = vsub.f32 %v58_v26, %v1081_v34  ;;  %v156_v53 = vsub.f32 %v1067_v29, %v1099_v41 }
  0x18   :  { %233 = vmatpush.msra.mxu2 %v1039_v19  ;;  %290 = vmatpush.msra.mxu3 %v1021_v10  ;;  %v1134_v55 = vand.u32 4294901760, %v144_v44  ;;  %v1136_v56 = vand.u32 4294901760, %v55_v48  ;;  %v1139_v57 = vand.u32 4294901760, %v1110_v46  ;;  %v1142_v58 = vsub.f32 %v57_v36, %v1107_v45 }
  0x19   :  { %79 = vmatpush.msra.mxu0 %v1023_v11  ;;  %128 = vmatpush.msra.mxu1 %v1090_v38  ;;  %v162_v59 = vsub.f32 %v1084_v35, %v1115_v47  ;;  %v1150_v61 = vand.u32 4294901760, %v150_v50  ;;  %v1152_v62 = vand.u32 4294901760, %v54_v54  ;;  %v1155_v63 = vand.u32 4294901760, %v1126_v52 }
  0x1a   :  { %236 = vmatpush.msra.mxu2 %v1042_v20  ;;  %292 = vmatpush.msra.mxu3 %v1023_v11  ;;  %v1158_v0 = vsub.f32 %v56_v42, %v1123_v51  ;;  %v1161_v1 = vand.u32 4294901760, %v156_v53  ;;  %v168_v6 = vsub.f32 %v1110_v46, %v1139_v57  ;;  %v1168_v7 = vand.u32 4294901760, %v53_v60 }
  0x1b   :  { %81 = vmatpush.msra.mxu0 %v1036_v17  ;;  %134 = vmatpush.msra.mxu1 %v1103_v43  ;;  %v1171_v8 = vand.u32 4294901760, %v1142_v58  ;;  %v1174_v12 = vsub.f32 %v55_v48, %v1136_v56  ;;  %v1177_v13 = vand.u32 4294901760, %v162_v59  ;;  %v174_v18 = vsub.f32 %v1126_v52, %v1155_v63 }
  0x1c   :  { %239 = vmatpush.msra.mxu2 %v1058_v25  ;;  %294 = vmatpush.msra.mxu3 %v1036_v17  ;;  %1470 = vst [vmem:[#allocation11_spill] sm:$0xff] %v1158_v0  ;;  %v1184_v26 = vand.u32 4294901760, %v52_v2  ;;  %v1187_v30 = vand.u32 4294901760, %v1158_v0  ;;  %v1190_v31 = vsub.f32 %v54_v54, %v1152_v62  ;;  %v1196_v32 = vand.u32 4294901760, %v168_v6 }
  0x1d   :  { %83 = vmatpush.msra.mxu0 %v1044_v21  ;;  %140 = vmatpush.msra.mxu1 %v1119_v49  ;;  %1471 = vst [vmem:[#allocation12_spill] sm:$0xff] %v1174_v12  ;;  %v180_v36 = vsub.f32 %v1142_v58, %v1171_v8  ;;  %v1201_v39 = vand.u32 4294901760, %v1174_v12  ;;  %v1204_v42 = vsub.f32 %v53_v60, %v1168_v7  ;;  %v1210_v44 = vand.u32 4294901760, %v174_v18 }
  0x1e   :  { %242 = vmatpush.msra.mxu2 %v1067_v29  ;;  %296 = vmatpush.msra.mxu3 %v1044_v21  ;;  %1472 = vst [vmem:[#allocation13_spill] sm:$0xff] %v1190_v31  ;;  %v186_v48 = vsub.f32 %v1158_v0, %v1187_v30  ;;  %v1215_v50 = vand.u32 4294901760, %v1190_v31  ;;  %v1218_v53 = vsub.f32 %v52_v2, %v1184_v26 }
  0x1f   :  { %85 = vmatpush.msra.mxu0 %v1064_v28  ;;  %146 = vmatpush.msra.mxu1 %v1134_v55  ;;  %1473 = vst [vmem:[#allocation14_spill] sm:$0xff] %v1204_v42  ;;  %v1224_v54 = vand.u32 4294901760, %v180_v36  ;;  %v192_v59 = vsub.f32 %v1174_v12, %v1201_v39  ;;  %v1229_v60 = vand.u32 4294901760, %v1204_v42 }
  0x20   :  { %245 = vmatpush.msra.mxu2 %v1084_v35  ;;  %298 = vmatpush.msra.mxu3 %v1064_v28  ;;  %v1235_v2 = vand.u32 4294901760, %v186_v48  ;;  %v198_v6 = vsub.f32 %v1190_v31, %v1215_v50  ;;  %v1240_v18 = vand.u32 4294901760, %v1218_v53 }
  0x21   :  { %87 = vmatpush.msra.mxu0 %v1081_v34  ;;  %152 = vmatpush.msra.mxu1 %v1150_v61  ;;  %v1246_v36 = vand.u32 4294901760, %v192_v59  ;;  %v204_v48 = vsub.f32 %v1204_v42, %v1229_v60  ;;  %v1260_v59 = vld [vmem:[#allocation2] sm:$0xff] }
  0x22   :  { %248 = vmatpush.msra.mxu2 %v1110_v46  ;;  %300 = vmatpush.msra.mxu3 %v1081_v34 }
  0x23   :  { %89 = vmatpush.msra.mxu0 %v1107_v45  ;;  %158 = vmatpush.msra.mxu1 %v1161_v1 }
  0x24   :  { %251 = vmatpush.msra.mxu2 %v1126_v52  ;;  %302 = vmatpush.msra.mxu3 %v1107_v45 }
  0x25   :  { %91 = vmatpush.msra.mxu0 %v1123_v51  ;;  %164 = vmatpush.msra.mxu1 %v1177_v13 }
  0x26   :  { %254 = vmatpush.msra.mxu2 %v1142_v58  ;;  %304 = vmatpush.msra.mxu3 %v1123_v51 }
  0x27   :  { %93 = vmatpush.msra.mxu0 %v1136_v56  ;;  %170 = vmatpush.msra.mxu1 %v1196_v32 }
  0x28   :  { %257 = vmatpush.msra.mxu2 %v1158_v0  ;;  %306 = vmatpush.msra.mxu3 %v1136_v56  ;;  %v210_v0 = vsub.f32 %v1218_v53, %v1240_v18 }
  0x29   :  { %95 = vmatpush.msra.mxu0 %v1152_v62  ;;  %176 = vmatpush.msra.mxu1 %v1210_v44 }
  0x2a   :  { %260 = vmatpush.msra.mxu2 %v1174_v12  ;;  %308 = vmatpush.msra.mxu3 %v1152_v62  ;;  %v1254_v12 = vand.u32 4294901760, %v198_v6  ;;  %v1270_v6 = vand.u32 4294901760, %v210_v0 }
  0x2b   :  { %97 = vmatpush.msra.mxu0 %v1168_v7  ;;  %182 = vmatpush.msra.mxu1 %v1224_v54 }
  0x2c   :  { %263 = vmatpush.msra.mxu2 %v1190_v31  ;;  %310 = vmatpush.msra.mxu3 %v1168_v7  ;;  %v1263_v31 = vand.u32 4294901760, %v204_v48 }
  0x2d   :  { %99 = vmatpush.msra.mxu0 %v1184_v26  ;;  %188 = vmatpush.msra.mxu1 %v1235_v2 }
  0x2e   :  { %266 = vmatpush.msra.mxu2 %v1204_v42  ;;  %312 = vmatpush.msra.mxu3 %v1184_v26  ;;  %v1273_v42 = vand.u32 4294901760, %v1260_v59 }
  0x2f   :  { %329 = vmatpush.msrb.mxu0 %v1049_v22  ;;  %194 = vmatpush.msra.mxu1 %v1246_v36 }
  0x30   :  { %269 = vmatpush.msra.mxu2 %v1218_v53  ;;  %496 = vmatpush.msrb.mxu3 %v1087_v37  ;;  %v101_v0 = vsub.f32 %v1260_v59, %v1273_v42  ;;  %v1291_v37 = vld [vmem:[#allocation2 + $0x8] sm:$0xff] }
  0x31   :  { %333 = vmatpush.msrb.mxu0 %v1052_v23  ;;  %200 = vmatpush.msra.mxu1 %v1254_v12 }
  0x32   :  { %443 = vmatpush.msrb.mxu2 %v1013_v3  ;;  %502 = vmatpush.msrb.mxu3 %v1090_v38  ;;  %v102_v38 = vand.u32 4294901760, %v101_v0 }
  0x33   :  { %337 = vmatpush.msrb.mxu0 %v1055_v24  ;;  %206 = vmatpush.msra.mxu1 %v1263_v31 }
  0x34   :  { %445 = vmatpush.msrb.mxu2 %v1015_v4  ;;  %508 = vmatpush.msrb.mxu3 %v1103_v43  ;;  %v1300_v43 = vand.u32 4294901760, %v1291_v37 }
  0x35   :  { %341 = vmatpush.msrb.mxu0 %v1062_v27  ;;  %212 = vmatpush.msra.mxu1 %v1270_v6 }
  0x36   :  { %447 = vmatpush.msrb.mxu2 %v1017_v5  ;;  %514 = vmatpush.msrb.mxu3 %v1119_v49  ;;  %v103_v49 = vsub.f32 %v101_v0, %v102_v38 }
  0x37   :  { %345 = vmatpush.msrb.mxu0 %v1078_v33  ;;  %400 = vmatpush.msrb.mxu1 %v1013_v3 }
  0x38   :  { %449 = vmatpush.msrb.mxu2 %v1019_v9  ;;  %520 = vmatpush.msrb.mxu3 %v1134_v55  ;;  %v1312_v55 = vsub.f32 %v1291_v37, %v1300_v43 }
  0x39   :  { %349 = vmatpush.msrb.mxu0 %v1095_v40  ;;  %402 = vmatpush.msrb.mxu1 %v1015_v4 }
  0x3a   :  { %451 = vmatpush.msrb.mxu2 %v1021_v10  ;;  %526 = vmatpush.msrb.mxu3 %v1150_v61  ;;  %v104_v61 = vand.u32 4294901760, %v103_v49 }
  0x3b   :  { %353 = vmatpush.msrb.mxu0 %v1099_v41  ;;  %404 = vmatpush.msrb.mxu1 %v1017_v5 }
  0x3c   :  { %453 = vmatpush.msrb.mxu2 %v1023_v11  ;;  %532 = vmatpush.msrb.mxu3 %v1161_v1  ;;  %v110_v1 = vand.u32 4294901760, %v1312_v55 }
  0x3d   :  { %357 = vmatpush.msrb.mxu0 %v1115_v47  ;;  %406 = vmatpush.msrb.mxu1 %v1019_v9 }
  0x3e   :  { %455 = vmatpush.msrb.mxu2 %v1036_v17  ;;  %538 = vmatpush.msrb.mxu3 %v1177_v13  ;;  %v111_v13 = vsub.f32 %v1312_v55, %v110_v1 }
  0x3f   :  { %361 = vmatpush.msrb.mxu0 %v1139_v57  ;;  %408 = vmatpush.msrb.mxu1 %v1021_v10 }
  0x40   :  { %457 = vmatpush.msrb.mxu2 %v1044_v21  ;;  %544 = vmatpush.msrb.mxu3 %v1196_v32  ;;  %v112_v32 = vand.u32 4294901760, %v111_v13 }
  0x41   :  { %365 = vmatpush.msrb.mxu0 %v1155_v63  ;;  %410 = vmatpush.msrb.mxu1 %v1023_v11 }
  0x42   :  { %459 = vmatpush.msrb.mxu2 %v1064_v28  ;;  %105 = vmatmul.f32.vlgmr.msra.gmra.mxu0 %v104_v61 }
  0x43   :  { %369 = vmatpush.msrb.mxu0 %v1171_v8  ;;  %412 = vmatpush.msrb.mxu1 %v1036_v17 }
  0x44   :  { %461 = vmatpush.msrb.mxu2 %v1081_v34  ;;  %550 = vmatpush.msrb.mxu3 %v1210_v44  ;;  %v440_v44 = vmul.f32 %v1260_v59, %v1260_v59 }
  0x45   :  { %373 = vmatpush.msrb.mxu0 %v1187_v30  ;;  %414 = vmatpush.msrb.mxu1 %v1044_v21 }
  0x46   :  { %463 = vmatpush.msrb.mxu2 %v1107_v45  ;;  %214 = vmatmul.f32.vlgmr.msra.gmra.mxu1 %v1273_v42 }
  0x47   :  { %377 = vmatpush.msrb.mxu0 %v1201_v39  ;;  %416 = vmatpush.msrb.mxu1 %v1064_v28 }
  0x48   :  { %465 = vmatpush.msrb.mxu2 %v1123_v51  ;;  %556 = vmatpush.msrb.mxu3 %v1224_v54 }
  0x49   :  { %381 = vmatpush.msrb.mxu0 %v1215_v50  ;;  %418 = vmatpush.msrb.mxu1 %v1081_v34 }
  0x4a   :  { %467 = vmatpush.msrb.mxu2 %v1136_v56  ;;  %562 = vmatpush.msrb.mxu3 %v1235_v2 }
  0x4b   :  { %385 = vmatpush.msrb.mxu0 %v1229_v60  ;;  %420 = vmatpush.msrb.mxu1 %v1107_v45 }
  0x4c   :  { %272 = vmatmul.f32.vlgmr.msra.gmra.mxu2 %v101_v0  ;;  %568 = vmatpush.msrb.mxu3 %v1246_v36 }
  0x4d   :  { %389 = vmatpush.msrb.mxu0 %v1240_v18  ;;  %422 = vmatpush.msrb.mxu1 %v1123_v51 }
  0x4e   :  { %469 = vmatpush.msrb.mxu2 %v1152_v62  ;;  %113 = vmatmul.f32.gmra.mxu0 %v112_v32 }
  0x4f   :  { %598 = vmatpush.msra.mxu0 %v1027_v14  ;;  %316 = vmatmul.f32.vlgmr.msra.gmra.mxu3 %v102_v38  ;;  %v1354_v14 = vand.u32 4294901760, %v440_v44 }
  0x50   :  { %424 = vmatpush.msrb.mxu1 %v1136_v56  ;;  %471 = vmatpush.msrb.mxu2 %v1168_v7 }
  0x51   :  { %574 = vmatpush.msrb.mxu3 %v1254_v12  ;;  %601 = vmatpush.msra.mxu0 %v1030_v15  ;;  %v1365_v15 = vsub.f32 %v440_v44, %v1354_v14 }
  0x52   :  { %218 = vmatmul.f32.gmra.mxu1 %v1300_v43  ;;  %473 = vmatpush.msrb.mxu2 %v1184_v26 }
  0x53   :  { %426 = vmatpush.msrb.mxu1 %v1152_v62  ;;  %580 = vmatpush.msrb.mxu3 %v1263_v31 }
  0x54   :  { %604 = vmatpush.msra.mxu0 %v1034_v16  ;;  %703 = vmatpush.msra.mxu2 %v1049_v22  ;;  %v441_v16 = vmul.f32 %v1291_v37, %v1291_v37  ;;  %v1475_v22 = vld [vmem:[#allocation12_spill] sm:$0xff] }
  0x55   :  { %428 = vmatpush.msrb.mxu1 %v1168_v7  ;;  %586 = vmatpush.msrb.mxu3 %v1270_v6 }
  0x56   :  { %607 = vmatpush.msra.mxu0 %v1039_v19  ;;  %707 = vmatpush.msra.mxu2 %v1052_v23  ;;  %v476_v19 = vand.u32 4294901760, %v1365_v15 }
  0x57   :  { %774 = vmatpush.msra.mxu3 %v1013_v3  ;;  %277 = vmatmul.f32.gmra.mxu2 %v1312_v55 }
  0x58   :  { %430 = vmatpush.msrb.mxu1 %v1184_v26  ;;  %610 = vmatpush.msra.mxu0 %v1042_v20  ;;  %v1379_v20 = vand.u32 4294901760, %v441_v16 }
  0x59   :  { %711 = vmatpush.msra.mxu2 %v1055_v24  ;;  %776 = vmatpush.msra.mxu3 %v1015_v4 }
  0x5a   :  { %656 = vmatpush.msra.mxu1 %v1013_v3  ;;  %391 = vmatmul.f32.vlgmr.msrb.gmra.mxu0 %v1273_v42  ;;  %v477_v3 = vsub.f32 %v1365_v15, %v476_v19 }
  0x5b   :  { %322 = vmatmul.f32.gmra.mxu3 %v110_v1  ;;  %613 = vmatpush.msra.mxu0 %v1058_v25 }
  0x5c   :  { %658 = vmatpush.msra.mxu1 %v1015_v4  ;;  %715 = vmatpush.msra.mxu2 %v1062_v27  ;;  %v483_v4 = vsub.f32 %v441_v16, %v1379_v20 }
  0x5d   :  { %778 = vmatpush.msra.mxu3 %v1017_v5  ;;  %432 = vmatmul.f32.vlgmr.msrb.gmra.mxu1 %v1273_v42 }
  0x5e   :  { %616 = vmatpush.msra.mxu0 %v1067_v29  ;;  %660 = vmatpush.msra.mxu1 %v1017_v5  ;;  %v478_v5 = vand.u32 4294901760, %v477_v3 }
  0x5f   :  { %719 = vmatpush.msra.mxu2 %v1078_v33  ;;  %780 = vmatpush.msra.mxu3 %v1019_v9 }
  0x60   :  { %619 = vmatpush.msra.mxu0 %v1084_v35  ;;  %662 = vmatpush.msra.mxu1 %v1019_v9  ;;  %v484_v9 = vand.u32 4294901760, %v483_v4 }
  0x61   :  { %723 = vmatpush.msra.mxu2 %v1095_v40  ;;  %782 = vmatpush.msra.mxu3 %v1021_v10 }
  0x62   :  { %622 = vmatpush.msra.mxu0 %v1110_v46  ;;  %664 = vmatpush.msra.mxu1 %v1021_v10  ;;  %v485_v10 = vsub.f32 %v483_v4, %v484_v9 }
  0x63   :  { %727 = vmatpush.msra.mxu2 %v1099_v41  ;;  %784 = vmatpush.msra.mxu3 %v1023_v11 }
  0x64   :  { %395 = vmatmul.f32.gmra.mxu0 %v1300_v43  ;;  %666 = vmatpush.msra.mxu1 %v1023_v11  ;;  %v1474_v11 = vld [vmem:[#allocation11_spill] sm:$0xff]  ;;  %v486_v23 = vand.u32 4294901760, %v485_v10 }
  0x65   :  { %625 = vmatpush.msra.mxu0 %v1126_v52  ;;  %731 = vmatpush.msra.mxu2 %v1115_v47 }
  0x66   :  { %786 = vmatpush.msra.mxu3 %v1036_v17  ;;  %436 = vmatmul.f32.gmra.mxu1 %v1300_v43 }
  0x67   :  { %479 = vmatmul.f32.vlgmr.msrb.gmra.mxu2 %v478_v5  ;;  %588 = vmatmul.f32.vlgmr.msrb.gmra.mxu3 %v1354_v14 }
  0x68   :  { %628 = vmatpush.msra.mxu0 %v1142_v58  ;;  %668 = vmatpush.msra.mxu1 %v1036_v17  ;;  %v1476_v17 = vld [vmem:[#allocation13_spill] sm:$0xff] }
  0x69   :  { %735 = vmatpush.msra.mxu2 %v1139_v57  ;;  %788 = vmatpush.msra.mxu3 %v1044_v21 }
  0x6a   :  { %631 = vmatpush.msra.mxu0 %v1474_v11  ;;  %670 = vmatpush.msra.mxu1 %v1044_v21  ;;  %v1477_v21 = vld [vmem:[#allocation14_spill] sm:$0xff] }
  0x6b   :  { %739 = vmatpush.msra.mxu2 %v1155_v63  ;;  %790 = vmatpush.msra.mxu3 %v1064_v28 }
  0x6c   :  { %634 = vmatpush.msra.mxu0 %v1475_v22  ;;  %672 = vmatpush.msra.mxu1 %v1064_v28 }
  0x6d   :  { %743 = vmatpush.msra.mxu2 %v1171_v8  ;;  %792 = vmatpush.msra.mxu3 %v1081_v34 }
  0x6e   :  { %637 = vmatpush.msra.mxu0 %v1476_v17  ;;  %674 = vmatpush.msra.mxu1 %v1081_v34 }
  0x6f   :  { %747 = vmatpush.msra.mxu2 %v1187_v30  ;;  %794 = vmatpush.msra.mxu3 %v1107_v45 }
  0x70   :  { %487 = vmatmul.f32.gmra.mxu2 %v486_v23  ;;  %592 = vmatmul.f32.gmra.mxu3 %v1379_v20 }
  0x71   :  { %640 = vmatpush.msra.mxu0 %v1477_v21  ;;  %676 = vmatpush.msra.mxu1 %v1107_v45 }
  0x72   :  { %751 = vmatpush.msra.mxu2 %v1201_v39  ;;  %796 = vmatpush.msra.mxu3 %v1123_v51 }
  0x73   :  { %643 = vmatpush.msra.mxu0 %v1218_v53  ;;  %678 = vmatpush.msra.mxu1 %v1123_v51 }
  0x74   :  { %755 = vmatpush.msra.mxu2 %v1215_v50  ;;  %798 = vmatpush.msra.mxu3 %v1136_v56 }
  0x75   :  { %646 = vmatmul.f32.vlgmr.msra.gmra.mxu0 %v1365_v15  ;;  %680 = vmatpush.msra.mxu1 %v1136_v56 }
  0x76   :  { %759 = vmatpush.msra.mxu2 %v1229_v60  ;;  %800 = vmatpush.msra.mxu3 %v1152_v62 }
  0x77   :  { %682 = vmatpush.msra.mxu1 %v1152_v62 }
  0x78   :  { %763 = vmatpush.msra.mxu2 %v1240_v18  ;;  %802 = vmatpush.msra.mxu3 %v1168_v7 }
  0x79   :  { %765 = vmatmul.f32.vlgmr.msra.gmra.mxu2 %v1354_v14  ;;  %684 = vmatpush.msra.mxu1 %v1168_v7 }
  0x7a   :  { %804 = vmatpush.msra.mxu3 %v1184_v26 }
  0x7b   :  { %806 = vmatmul.f32.vlgmr.msra.gmra.mxu3 %v1354_v14  ;;  %686 = vmatpush.msra.mxu1 %v1184_v26 }
  0x7c   :  { %690 = vmatmul.f32.vlgmr.msra.gmra.mxu1 %v476_v19 }
  0x7d   :  { %651 = vmatmul.f32.gmra.mxu0 %v483_v4 }
  0x81   :  { %769 = vmatmul.f32.gmra.mxu2 %v1379_v20 }
  0x83   :  { %810 = vmatmul.f32.gmra.mxu3 %v1379_v20 }
  0x84   :  { %696 = vmatmul.f32.gmra.mxu1 %v484_v9 }
  0xbf   :  { %v106_v24 = vpop.f32.mrf.mxu0 }
  0xc3   :  { %v215_v25 = vpop.f32.mrf.mxu1 }
  0xc4   :  { %v216_v41 = vadd.f32 %v215_v25, %v106_v24  ;;  %v887_v25 = vld [vmem:[%s1463_s2] ss:$0 sm:$0xff]  ;;  %s975_s2 = smov [#allocation7]  }
  0xc5   :  { %s866_s29 = sshll.u32 %s975_s2, 4  ;;  %s867_s29 = int_to_ptr.vmem [resolvable:$true] %s866_s29 }
  0xcb   :  { %v114_v27 = vpop.f32.mrf.mxu0 }
  0xcf   :  { %v273_v28 = vpop.f32.mrf.mxu2  ;;  %v219_v33 = vpop.f32.mrf.mxu1 }
  0xd0   :  { %v274_v47 = vadd.f32 %v273_v28, %v216_v41  ;;  %v220_v56 = vadd.f32 %v219_v33, %v114_v27  ;;  %v888_v33 = vld [vmem:[%s1464_s3] ss:$0 sm:$0xff] }
  0xd2   :  { %v317_v29 = vpop.f32.mrf.mxu3 }
  0xd3   :  { %v318_v57 = vadd.f32 %v317_v29, %v274_v47 }
  0xd7   :  { %v392_v34 = vpop.f32.mrf.mxu0 }
  0xd8   :  { %v393_v62 = vadd.f32 %v392_v34, %v318_v57 }
  0xda   :  { %v278_v35 = vpop.f32.mrf.mxu2  ;;  %v433_v45 = vpop.f32.mrf.mxu1 }
  0xdb   :  { %v279_v63 = vadd.f32 %v278_v35, %v220_v56  ;;  %v434_v30 = vadd.f32 %v433_v45, %v393_v62 }
  0xdd   :  { %v814_v53 = vmul.f32 0.03125, %v434_v30 }
  0xde   :  { %v323_v40 = vpop.f32.mrf.mxu3 }
  0xdf   :  { %v324_v31 = vadd.f32 %v323_v40, %v279_v63  ;;  %v816_v6 = vmul.f32 %v814_v53, %v434_v30  ;;  %v844_v24 = vsub.f32 %v1260_v59, %v814_v53 }
  0xe1   :  { %v396_v51 = vpop.f32.mrf.mxu0 }
  0xe2   :  { %v397_v54 = vadd.f32 %v396_v51, %v324_v31 }
  0xe3   :  { %v437_v58 = vpop.f32.mrf.mxu1 }
  0xe4   :  { %v438_v0 = vadd.f32 %v437_v58, %v397_v54 }
  0xe6   :  { %v815_v1 = vmul.f32 0.03125, %v438_v0 }
  0xe8   :  { %v817_v16 = vmul.f32 %v815_v1, %v438_v0  ;;  %v845_v59 = vsub.f32 %v1291_v37, %v815_v1 }
  0xea   :  { %v480_v46 = vpop.f32.mrf.mxu2  ;;  %v589_v52 = vpop.f32.mrf.mxu3 }
  0xeb   :  { %v590_v12 = vadd.f32 %v589_v52, %v480_v46 }
  0xf2   :  { %v647_v7 = vpop.f32.mrf.mxu0 }
  0xf3   :  { %v488_v8 = vpop.f32.mrf.mxu2  ;;  %v593_v26 = vpop.f32.mrf.mxu3  ;;  %v648_v39 = vadd.f32 %v647_v7, %v590_v12 }
  0xf4   :  { %v594_v36 = vadd.f32 %v593_v26, %v488_v8 }
  0xf9   :  { %v691_v42 = vpop.f32.mrf.mxu1 }
  0xfa   :  { %v692_v50 = vadd.f32 %v691_v42, %v648_v39  ;;  %v652_v2 = vpop.f32.mrf.mxu0 }
  0xfb   :  { %v653_v43 = vadd.f32 %v652_v2, %v594_v36 }
  0xfc   :  { %v766_v60 = vpop.f32.mrf.mxu2 }
  0xfd   :  { %v767_v18 = vadd.f32 %v766_v60, %v692_v50 }
  0xfe   :  { %v807_v48 = vpop.f32.mrf.mxu3 }
  0xff   :  { %v808_v38 = vadd.f32 %v807_v48, %v767_v18 }
 0x101   :  { %v818_v49 = vsub.f32 %v808_v38, %v816_v6  ;;  %v697_v55 = vpop.f32.mrf.mxu1 }
 0x102   :  { %v698_v61 = vadd.f32 %v697_v55, %v653_v43 }
 0x103   :  { %v820_v13 = vmul.f32 0.032258064, %v818_v49 }
 0x104   :  { %v770_v32 = vpop.f32.mrf.mxu2 }
 0x105   :  { %v822_v44 = vadd.f32 1e-05, %v820_v13  ;;  %v771_v14 = vadd.f32 %v770_v32, %v698_v61 }
 0x106   :  { %v811_v15 = vpop.f32.mrf.mxu3 }
 0x107   :  { %889 = vrsqrt.f32 %v822_v44  ;;  %v812_v19 = vadd.f32 %v811_v15, %v771_v14  ;;  %vm830_vm1 = vweird.f32 %v822_v44 }
 0x109   :  { %v819_v20 = vsub.f32 %v812_v19, %v817_v16 }
 0x10b   :  { %v821_v3 = vmul.f32 0.032258064, %v819_v20 }
 0x10d   :  { %v890_v4 = vpop.eup %889  ;;  %v823_v5 = vadd.f32 1e-05, %v821_v3 }
 0x10e   :  { %v825_v9 = vmul.f32 %v890_v4, %v822_v44  ;;  %vm831_vm0 = vweird.f32 %v890_v4 }
 0x10f   :  { %891 = vrsqrt.f32 %v823_v5  ;;  %vm832_vm2 = vmor %vm830_vm1, %vm831_vm0  ;;  %vm840_vm4 = vweird.f32 %v823_v5 }
 0x110   :  { %v826_v10 = vmul.f32 %v890_v4, %v825_v9 }
 0x112   :  { %v827_v11 = vmul.f32 0.5, %v826_v10 }
 0x114   :  { %v828_v22 = vsub.f32 1.5, %v827_v11 }
 0x115   :  { %v892_v23 = vpop.eup %891 }
 0x116   :  { %v829_v17 = vmul.f32 %v890_v4, %v828_v22  ;;  %v835_v21 = vmul.f32 %v892_v23, %v823_v5  ;;  %vm841_vm3 = vweird.f32 %v892_v23 }
 0x117   :  { %vm842_vm5 = vmor %vm840_vm4, %vm841_vm3 }
 0x118   :  { %v833_v27 = vsel %vm832_vm2, %v890_v4, %v829_v17  ;;  %v836_v28 = vmul.f32 %v892_v23, %v835_v21 }
 0x119   :  { %v846_v29 = vmul.f32 %v844_v24, %v833_v27 }
 0x11a   :  { %v837_v34 = vmul.f32 0.5, %v836_v28 }
 0x11b   :  { %v852_v35 = vmul.f32 %v887_v25, %v846_v29 }
 0x11c   :  { %v838_v40 = vsub.f32 1.5, %v837_v34 }
 0x11d   :  { %v858_v41 = vadd.f32 %v888_v33, %v852_v35 }
 0x11e   :  { %v839_v45 = vmul.f32 %v892_v23, %v838_v40 }
 0x11f   :  { %860 = vst [vmem:[#allocation7] sm:$0xff] %v858_v41 }
 0x120   :  { %v843_v46 = vsel %vm842_vm5, %v892_v23, %v839_v45 }
 0x121   :  { %v847_v47 = vmul.f32 %v845_v59, %v843_v46 }
 0x123   :  { %v853_v51 = vmul.f32 %v887_v25, %v847_v47 }
 0x125   :  { %v859_v52 = vadd.f32 %v888_v33, %v853_v51 }
 0x127   :  { %861 = vst [vmem:[#allocation7 + $0x8] sm:$0xff] %v859_v52 }
 0x128   :  { %874 = dma.vmem_to_hbm [thread:$0]  %s867_s29, 256, %s869_s6, [#allocation4], %s972_s23, %s972_s23, %s973_s24  }
 0x129   :  { %969 = dma.done.wait [#allocation4], 256  }
 0x12a   :  { %970 = vsyncadd [#allocation4], 4294967040 }
 0x12b   :  { %879 = vsyncpa [#allocation3], 1 }
 0x12c   :  { %880 = vsyncpa [#allocation6], 1 }
 0x12d   :  { %881 = vsyncpa [#allocation4], 1 }

</bundles_post_ra>
